<compile_context>
chip_gen: v7x
topology: tpu7x:2x2x1
jax: 0.10.0
libtpu: 0.0.40
codegen_flags: <defaults>
</compile_context>

<pallas_src>
import functools

import jax
import jax.numpy as jnp
import numpy as np
from jax.experimental import pallas as pl
from jax.experimental.pallas import tpu as pltpu

_LANE = 512          # lane-dense last dim (multiple of 128)
_MAX_TN = 512        # max rows per tile -> 512x512 f32 = 1 MiB per input tile
_NSPLIT = 2          # leading "parallel" grid axis (2 TCs on v7x; no-op elsewhere)


def _round_up(x, m):
    return ((x + m - 1) // m) * m


# --------------------------------------------------------------------------- #
# Pallas kernels: streamed scalar-sum reductions
# --------------------------------------------------------------------------- #
def _focal_sum_kernel(x_ref, t_ref, out_ref, acc_ref, *, alpha, gamma):
    """Sum of focal loss over a lane-dense (rows, LANE) stream."""
    j = pl.program_id(1)

    @pl.when(j == 0)
    def _():
        acc_ref[...] = jnp.zeros_like(acc_ref)

    x = x_ref[...].astype(jnp.float32)
    t = t_ref[...].astype(jnp.float32)

    # softplus-stable BCE-with-logits + focal modulator:
    #   sp            = log1p(exp(-|x|))
    #   softplus(-x)  = sp + relu(-x)
    #   ce            = relu(x) - x*t + sp
    #   modulator     = exp(gamma * (-t*x - softplus(-x)))
    sp = jnp.log1p(jnp.exp(-jnp.abs(x)))
    relu_neg_x = jnp.maximum(-x, 0.0)
    ce = jnp.maximum(x, 0.0) - x * t + sp
    modulator = jnp.exp(gamma * (-t * x - relu_neg_x - sp))

    # alpha weighting + valid-anchor (!= -2) mask folded into one multiplier
    pos = (t == 1.0).astype(jnp.float32)
    valid = (t != -2.0).astype(jnp.float32)
    w = ((1.0 - alpha) + (2.0 * alpha - 1.0) * pos) * valid

    contrib = modulator * ce * w
    # sublane reduce only; lane axis stays dense in the accumulator
    acc_ref[...] = acc_ref[...] + jnp.sum(contrib, axis=0, keepdims=True)

    @pl.when(j == pl.num_programs(1) - 1)
    def _():
        total = jnp.sum(acc_ref[...])
        out_ref[...] = jnp.broadcast_to(total, out_ref.shape)


def _huber_sum_kernel(o_ref, t_ref, out_ref, acc_ref, *, delta):
    """Sum of masked huber loss over a lane-dense (rows, LANE) stream."""
    j = pl.program_id(1)

    @pl.when(j == 0)
    def _():
        acc_ref[...] = jnp.zeros_like(acc_ref)

    o = o_ref[...].astype(jnp.float32)
    t = t_ref[...].astype(jnp.float32)

    mask = (t != 0.0).astype(jnp.float32)
    abs_err = jnp.abs(o - t)
    quadratic = jnp.minimum(abs_err, delta)      # torch.clamp(abs_err, max=delta)
    linear = abs_err - quadratic
    hub = 0.5 * quadratic * quadratic + delta * linear

    acc_ref[...] = acc_ref[...] + jnp.sum(hub * mask, axis=0, keepdims=True)

    @pl.when(j == pl.num_programs(1) - 1)
    def _():
        total = jnp.sum(acc_ref[...])
        out_ref[...] = jnp.broadcast_to(total, out_ref.shape)


def _stream_sum(kernel, a_flat, b_flat, pad_a, pad_b):
    """Pad two matching 1-D streams to a lane-dense slab and reduce to a scalar."""
    e = int(a_flat.shape[0])
    rows = -(-e // _LANE)
    tn = min(_MAX_TN, _round_up(-(-rows // _NSPLIT), 8))
    padded_rows = _round_up(max(rows, 1), _NSPLIT * tn)
    pe = padded_rows * _LANE
    tiles_per_split = padded_rows // (_NSPLIT * tn)

    a2 = jnp.pad(a_flat, (0, pe - e), constant_values=pad_a).reshape(padded_rows, _LANE)
    b2 = jnp.pad(b_flat, (0, pe - e), constant_values=pad_b).reshape(padded_rows, _LANE)

    row_map = lambda i, j: (i * tiles_per_split + j, 0)

    out = pl.pallas_call(
        kernel,
        out_shape=jax.ShapeDtypeStruct((_NSPLIT, 8, 128), jnp.float32),
        grid=(_NSPLIT, tiles_per_split),
        in_specs=[pl.BlockSpec((tn, _LANE), row_map),
                  pl.BlockSpec((tn, _LANE), row_map)],
        out_specs=pl.BlockSpec((1, 8, 128), lambda i, j: (i, 0, 0)),
        scratch_shapes=[pltpu.VMEM((1, _LANE), jnp.float32)],
        compiler_params=pltpu.CompilerParams(
            dimension_semantics=("parallel", "arbitrary")),
    )(a2, b2)
    return jnp.sum(out[:, 0, 0])


# --------------------------------------------------------------------------- #
# JAX wrapper mirroring loss_fn / DetectionLoss.forward
# --------------------------------------------------------------------------- #
@functools.partial(jax.jit, static_argnames=("num_classes", "alpha", "gamma",
                                             "delta", "box_loss_weight"))
def detection_loss(cls_outputs, box_outputs, cls_targets, box_targets,
                   num_positives, *, num_classes, alpha, gamma, delta,
                   box_loss_weight):
    num_positives_sum = jnp.sum(num_positives.astype(jnp.float32)) + 1.0

    cls_x_parts, cls_t_parts, box_o_parts, box_t_parts = [], [], [], []
    for l in range(len(cls_outputs)):
        # NCHW -> NHWC so logits line up elementwise with the NHWC targets,
        # then flatten to 1-D (fused into a single XLA copy; see TODO above).
        co = jnp.transpose(cls_outputs[l], (0, 2, 3, 1))
        cls_x_parts.append(co.reshape(-1))
        cls_t_parts.append(cls_targets[l].reshape(-1))

        bo = jnp.transpose(box_outputs[l], (0, 2, 3, 1))
        box_o_parts.append(bo.reshape(-1))
        box_t_parts.append(box_targets[l].reshape(-1))

    cls_x = jnp.concatenate(cls_x_parts)
    cls_t = jnp.concatenate(cls_t_parts)
    box_o = jnp.concatenate(box_o_parts)
    box_t = jnp.concatenate(box_t_parts)

    focal_kernel = functools.partial(_focal_sum_kernel, alpha=alpha, gamma=gamma)
    huber_kernel = functools.partial(_huber_sum_kernel, delta=delta)

    # padding: logits 0 / cls target -2 (valid mask -> 0); box out 0 / box target 0 (mask -> 0)
    cls_sum = _stream_sum(focal_kernel, cls_x, cls_t, 0.0, -2.0)
    box_sum = _stream_sum(huber_kernel, box_o, box_t, 0.0, 0.0)

    # all levels share the same normalizer, so dividing the fused sums once is
    # identical to summing per-level normalized losses.
    cls_loss = cls_sum / num_positives_sum
    box_loss = box_sum / (num_positives_sum * 4.0)
    # TODO(synk): reference loss_fn never returns (falls off the end); we return
    # (total, cls, box) per its docstring, with total = cls + w_box * box.
    total_loss = cls_loss + box_loss_weight * box_loss
    return total_loss, cls_loss, box_loss


class Config:
    def __init__(self, num_classes=8, alpha=0.25, gamma=1.5, delta=0.1,
                 box_loss_weight=50.0):
        self.num_classes = num_classes
        self.alpha = alpha
        self.gamma = gamma
        self.delta = delta
        self.box_loss_weight = box_loss_weight


class DetectionLoss:
    def __init__(self, config):
        self.config = config
        self.num_classes = config.num_classes

    def __call__(self, cls_outputs, box_outputs, cls_targets, box_targets,
                 num_positives):
        c = self.config
        return detection_loss(cls_outputs, box_outputs, cls_targets,
                              box_targets, num_positives,
                              num_classes=c.num_classes, alpha=c.alpha,
                              gamma=c.gamma, delta=c.delta,
                              box_loss_weight=c.box_loss_weight)


# --------------------------------------------------------------------------- #
# Pure-JAX reference (original-module math) for correctness check
# --------------------------------------------------------------------------- #
def _ref_loss(cls_outputs, box_outputs, cls_targets, box_targets,
              num_positives, alpha, gamma, delta, box_loss_weight):
    nps = jnp.sum(num_positives) + 1.0
    cls_l = 0.0
    box_l = 0.0
    for l in range(len(cls_outputs)):
        x = jnp.transpose(cls_outputs[l], (0, 2, 3, 1)).astype(jnp.float32)
        B, H, W, AC = x.shape
        t = cls_targets[l].reshape(B, H, W, AC)
        ce = jnp.maximum(x, 0.0) - x * t + jnp.log1p(jnp.exp(-jnp.abs(x)))
        mod = jnp.exp(gamma * t * (-x) - gamma * jnp.log1p(jnp.exp(-x)))
        loss = mod * ce
        w = jnp.where(t == 1.0, alpha * loss, (1.0 - alpha) * loss) / nps
        valid = (t != -2.0)
        cls_l = cls_l + jnp.sum(w * valid)

        bo = jnp.transpose(box_outputs[l], (0, 2, 3, 1)).astype(jnp.float32)
        bt = box_targets[l]
        mask = (bt != 0.0)
        ae = jnp.abs(bo - bt)
        q = jnp.minimum(ae, delta)
        hub = 0.5 * q * q + delta * (ae - q)
        box_l = box_l + jnp.sum(hub * mask) / (nps * 4.0)
    return cls_l + box_loss_weight * box_l, cls_l, box_l


# --------------------------------------------------------------------------- #
if __name__ == "__main__":
    key = jax.random.PRNGKey(0)
    B, A, C = 2, 4, 8
    level_hw = [(8, 8), (4, 4)]

    cls_outputs, box_outputs, cls_targets, box_targets = [], [], [], []
    for (H, W) in level_hw:
        key, k1, k2, k3, k4, k5 = jax.random.split(key, 6)
        cls_outputs.append(jax.random.normal(k1, (B, A * C, H, W), jnp.float32))
        box_outputs.append(jax.random.normal(k2, (B, A * 4, H, W), jnp.float32))
        labels = jax.random.randint(k3, (B, H, W, A), 0, C)
        cls_targets.append(jax.nn.one_hot(labels, C, dtype=jnp.float32))  # [B,H,W,A,C]
        bt = jax.random.normal(k4, (B, H, W, A * 4), jnp.float32)
        keep = jax.random.bernoulli(k5, 0.6, (B, H, W, A * 4))
        box_targets.append(jnp.where(keep, bt, 0.0))
    num_positives = jnp.array([3.0, 5.0], jnp.float32)

    cfg = Config(num_classes=C)
    loss_mod = DetectionLoss(cfg)

    total, cls_loss, box_loss = loss_mod(cls_outputs, box_outputs,
                                         cls_targets, box_targets,
                                         num_positives)
    total = jax.block_until_ready(total)
    cls_loss = jax.block_until_ready(cls_loss)
    box_loss = jax.block_until_ready(box_loss)

    ref_total, ref_cls, ref_box = _ref_loss(
        cls_outputs, box_outputs, cls_targets, box_targets, num_positives,
        cfg.alpha, cfg.gamma, cfg.delta, cfg.box_loss_weight)

    np.testing.assert_allclose(np.asarray(cls_loss), np.asarray(ref_cls),
                               rtol=1e-4, atol=1e-5)
    np.testing.assert_allclose(np.asarray(box_loss), np.asarray(ref_box),
                               rtol=1e-4, atol=1e-5)
    np.testing.assert_allclose(np.asarray(total), np.asarray(ref_total),
                               rtol=1e-4, atol=1e-4)
    print("KERNEL_OK")
</pallas_src>

<mosaic_0001>
module attributes {stable_mosaic.version = 11 : i64} {
  func.func @_focal_sum_kernel(%arg0: i32, %arg1: i32, %arg2: memref<8x512xf32, #tpu.memory_space<vmem>>, %arg3: memref<8x512xf32, #tpu.memory_space<vmem>>, %arg4: memref<1x8x128xf32, #tpu.memory_space<vmem>>, %arg5: memref<1x512xf32, #tpu.memory_space<vmem>>) attributes {dimension_semantics = [#tpu.dimension_semantics<parallel>, #tpu.dimension_semantics<arbitrary>], iteration_bounds = array<i64: 2, 1>, scalar_prefetch = 0 : i64, scratch_operands = 1 : i64, tpu.core_type = #tpu.core_type<tc>, window_params = [{transform_indices = @transform_0, window_bounds = array<i64: 8, 512>}, {transform_indices = @transform_1, window_bounds = array<i64: 8, 512>}, {transform_indices = @transform_2, window_bounds = array<i64: 1, 8, 128>}]} {
    %c0_i32 = arith.constant 0 : i32
    %0 = arith.cmpi eq, %arg1, %c0_i32 : i32
    %1 = arith.extui %0 : i1 to i32
    %c0_i32_0 = arith.constant 0 : i32
    %2 = arith.cmpi ne, %1, %c0_i32_0 : i32
    scf.if %2 {
      %cst_20 = arith.constant 0.000000e+00 : f32
      %50 = vector.broadcast %cst_20 : f32 to vector<1x512xf32>
      %c0_21 = arith.constant 0 : index
      %c0_22 = arith.constant 0 : index
      %51 = vector.load %arg5[%c0_21, %c0_22] : memref<1x512xf32, #tpu.memory_space<vmem>>, vector<1x512xf32>
      tpu.vector_store %arg5[%c0_21, %c0_22], %50 {strides = array<i32>} : memref<1x512xf32, #tpu.memory_space<vmem>>, vector<1x512xf32>,
    } else {
    }
    %c0 = arith.constant 0 : index
    %c0_1 = arith.constant 0 : index
    %3 = vector.load %arg2[%c0, %c0_1] : memref<8x512xf32, #tpu.memory_space<vmem>>, vector<8x512xf32>
    %c0_2 = arith.constant 0 : index
    %c0_3 = arith.constant 0 : index
    %4 = vector.load %arg3[%c0_2, %c0_3] : memref<8x512xf32, #tpu.memory_space<vmem>>, vector<8x512xf32>
    %5 = math.absf %3 : vector<8x512xf32>
    %cst = arith.constant 0.000000e+00 : f32
    %6 = vector.broadcast %cst : f32 to vector<8x512xf32>
    %7 = arith.subf %6, %5 : vector<8x512xf32>
    %8 = math.exp %7 : vector<8x512xf32>
    %9 = math.log1p %8 : vector<8x512xf32>
    %cst_4 = arith.constant 0.000000e+00 : f32
    %10 = vector.broadcast %cst_4 : f32 to vector<8x512xf32>
    %11 = arith.subf %10, %3 : vector<8x512xf32>
    %cst_5 = arith.constant 0.000000e+00 : f32
    %12 = vector.broadcast %cst_5 : f32 to vector<8x512xf32>
    %13 = arith.maximumf %11, %12 : vector<8x512xf32>
    %cst_6 = arith.constant 0.000000e+00 : f32
    %14 = vector.broadcast %cst_6 : f32 to vector<8x512xf32>
    %15 = arith.maximumf %3, %14 : vector<8x512xf32>
    %16 = arith.mulf %3, %4 : vector<8x512xf32>
    %17 = arith.subf %15, %16 : vector<8x512xf32>
    %18 = arith.addf %17, %9 : vector<8x512xf32>
    %cst_7 = arith.constant 0.000000e+00 : f32
    %19 = vector.broadcast %cst_7 : f32 to vector<8x512xf32>
    %20 = arith.subf %19, %4 : vector<8x512xf32>
    %21 = arith.mulf %20, %3 : vector<8x512xf32>
    %22 = arith.subf %21, %13 : vector<8x512xf32>
    %23 = arith.subf %22, %9 : vector<8x512xf32>
    %cst_8 = arith.constant 1.500000e+00 : f32
    %24 = vector.broadcast %cst_8 : f32 to vector<8x512xf32>
    %25 = arith.mulf %24, %23 : vector<8x512xf32>
    %26 = math.exp %25 : vector<8x512xf32>
    %cst_9 = arith.constant 1.000000e+00 : f32
    %27 = vector.broadcast %cst_9 : f32 to vector<8x512xf32>
    %28 = arith.cmpf oeq, %4, %27 : vector<8x512xf32>
    %29 = arith.extui %28 : vector<8x512xi1> to vector<8x512xi32>
    %30 = arith.sitofp %29 : vector<8x512xi32> to vector<8x512xf32>
    %cst_10 = arith.constant -2.000000e+00 : f32
    %31 = vector.broadcast %cst_10 : f32 to vector<8x512xf32>
    %32 = arith.cmpf one, %4, %31 : vector<8x512xf32>
    %33 = arith.extui %32 : vector<8x512xi1> to vector<8x512xi32>
    %34 = arith.sitofp %33 : vector<8x512xi32> to vector<8x512xf32>
    %cst_11 = arith.constant -5.000000e-01 : f32
    %35 = vector.broadcast %cst_11 : f32 to vector<8x512xf32>
    %36 = arith.mulf %35, %30 : vector<8x512xf32>
    %cst_12 = arith.constant 7.500000e-01 : f32
    %37 = vector.broadcast %cst_12 : f32 to vector<8x512xf32>
    %38 = arith.addf %37, %36 : vector<8x512xf32>
    %39 = arith.mulf %38, %34 : vector<8x512xf32>
    %40 = arith.mulf %26, %18 : vector<8x512xf32>
    %41 = arith.mulf %40, %39 : vector<8x512xf32>
    %c0_13 = arith.constant 0 : index
    %c0_14 = arith.constant 0 : index
    %42 = vector.load %arg5[%c0_13, %c0_14] : memref<1x512xf32, #tpu.memory_space<vmem>>, vector<1x512xf32>
    %cst_15 = arith.constant dense<0.000000e+00> : vector<512xf32>
    %43 = vector.multi_reduction <add>, %41, %cst_15 [0] : vector<8x512xf32> to vector<512xf32>
    %44 = vector.shape_cast %43 : vector<512xf32> to vector<1x512xf32>
    %45 = arith.addf %42, %44 : vector<1x512xf32>
    %c0_16 = arith.constant 0 : index
    %c0_17 = arith.constant 0 : index
    %46 = vector.load %arg5[%c0_16, %c0_17] : memref<1x512xf32, #tpu.memory_space<vmem>>, vector<1x512xf32>
    tpu.vector_store %arg5[%c0_16, %c0_17], %45 {strides = array<i32>} : memref<1x512xf32, #tpu.memory_space<vmem>>, vector<1x512xf32>,
    %c0_i32_18 = arith.constant 0 : i32
    %47 = arith.cmpi eq, %arg1, %c0_i32_18 : i32
    %48 = arith.extui %47 : i1 to i32
    %c0_i32_19 = arith.constant 0 : i32
    %49 = arith.cmpi ne, %48, %c0_i32_19 : i32
    scf.if %49 {
      %c0_20 = arith.constant 0 : index
      %c0_21 = arith.constant 0 : index
      %50 = vector.load %arg5[%c0_20, %c0_21] : memref<1x512xf32, #tpu.memory_space<vmem>>, vector<1x512xf32>
      %51 = vector.shape_cast %50 : vector<1x512xf32> to vector<1x1x512xf32>
      %cst_22 = arith.constant dense<0.000000e+00> : vector<1xf32>
      %52 = vector.multi_reduction <add>, %51, %cst_22 [1, 2] : vector<1x1x512xf32> to vector<1xf32>
      %53 = vector.shape_cast %52 : vector<1xf32> to vector<1x1x1xf32>
      %54 = vector.extract %53[0, 0, 0] : f32 from vector<1x1x1xf32>
      %55 = vector.broadcast %54 : f32 to vector<1x8x128xf32>
      %c0_23 = arith.constant 0 : index
      %c0_24 = arith.constant 0 : index
      %c0_25 = arith.constant 0 : index
      %56 = vector.load %arg4[%c0_23, %c0_24, %c0_25] : memref<1x8x128xf32, #tpu.memory_space<vmem>>, vector<1x8x128xf32>
      tpu.vector_store %arg4[%c0_23, %c0_24, %c0_25], %55 {strides = array<i32>} : memref<1x8x128xf32, #tpu.memory_space<vmem>>, vector<1x8x128xf32>,
    } else {
    }
    return
  }
  func.func @transform_0(%arg0: i32, %arg1: i32) -> (i32, i32) {
    %c1_i32 = arith.constant 1 : i32
    %0 = arith.muli %arg0, %c1_i32 : i32
    %1 = arith.addi %0, %arg1 : i32
    %c0_i32 = arith.constant 0 : i32
    %c0_i32_0 = arith.constant 0 : i32
    return %1, %c0_i32 : i32, i32
  }
  func.func @transform_1(%arg0: i32, %arg1: i32) -> (i32, i32) {
    %c1_i32 = arith.constant 1 : i32
    %0 = arith.muli %arg0, %c1_i32 : i32
    %1 = arith.addi %0, %arg1 : i32
    %c0_i32 = arith.constant 0 : i32
    %c0_i32_0 = arith.constant 0 : i32
    return %1, %c0_i32 : i32, i32
  }
  func.func @transform_2(%arg0: i32, %arg1: i32) -> (i32, i32, i32) {
    %c0_i32 = arith.constant 0 : i32
    %c0_i32_0 = arith.constant 0 : i32
    %c0_i32_1 = arith.constant 0 : i32
    return %arg0, %c0_i32, %c0_i32_0 : i32, i32, i32
  }
}

module attributes {stable_mosaic.version = 11 : i64} {
  func.func @_huber_sum_kernel(%arg0: i32, %arg1: i32, %arg2: memref<8x512xf32, #tpu.memory_space<vmem>>, %arg3: memref<8x512xf32, #tpu.memory_space<vmem>>, %arg4: memref<1x8x128xf32, #tpu.memory_space<vmem>>, %arg5: memref<1x512xf32, #tpu.memory_space<vmem>>) attributes {dimension_semantics = [#tpu.dimension_semantics<parallel>, #tpu.dimension_semantics<arbitrary>], iteration_bounds = array<i64: 2, 1>, scalar_prefetch = 0 : i64, scratch_operands = 1 : i64, tpu.core_type = #tpu.core_type<tc>, window_params = [{transform_indices = @transform_0, window_bounds = array<i64: 8, 512>}, {transform_indices = @transform_1, window_bounds = array<i64: 8, 512>}, {transform_indices = @transform_2, window_bounds = array<i64: 1, 8, 128>}]} {
    %c0_i32 = arith.constant 0 : i32
    %0 = arith.cmpi eq, %arg1, %c0_i32 : i32
    %1 = arith.extui %0 : i1 to i32
    %c0_i32_0 = arith.constant 0 : i32
    %2 = arith.cmpi ne, %1, %c0_i32_0 : i32
    scf.if %2 {
      %cst_14 = arith.constant 0.000000e+00 : f32
      %29 = vector.broadcast %cst_14 : f32 to vector<1x512xf32>
      %c0_15 = arith.constant 0 : index
      %c0_16 = arith.constant 0 : index
      %30 = vector.load %arg5[%c0_15, %c0_16] : memref<1x512xf32, #tpu.memory_space<vmem>>, vector<1x512xf32>
      tpu.vector_store %arg5[%c0_15, %c0_16], %29 {strides = array<i32>} : memref<1x512xf32, #tpu.memory_space<vmem>>, vector<1x512xf32>,
    } else {
    }
    %c0 = arith.constant 0 : index
    %c0_1 = arith.constant 0 : index
    %3 = vector.load %arg2[%c0, %c0_1] : memref<8x512xf32, #tpu.memory_space<vmem>>, vector<8x512xf32>
    %c0_2 = arith.constant 0 : index
    %c0_3 = arith.constant 0 : index
    %4 = vector.load %arg3[%c0_2, %c0_3] : memref<8x512xf32, #tpu.memory_space<vmem>>, vector<8x512xf32>
    %cst = arith.constant 0.000000e+00 : f32
    %5 = vector.broadcast %cst : f32 to vector<8x512xf32>
    %6 = arith.cmpf one, %4, %5 : vector<8x512xf32>
    %7 = arith.extui %6 : vector<8x512xi1> to vector<8x512xi32>
    %8 = arith.sitofp %7 : vector<8x512xi32> to vector<8x512xf32>
    %9 = arith.subf %3, %4 : vector<8x512xf32>
    %10 = math.absf %9 : vector<8x512xf32>
    %cst_4 = arith.constant 1.000000e-01 : f32
    %11 = vector.broadcast %cst_4 : f32 to vector<8x512xf32>
    %12 = arith.minimumf %10, %11 : vector<8x512xf32>
    %13 = arith.subf %10, %12 : vector<8x512xf32>
    %cst_5 = arith.constant 5.000000e-01 : f32
    %14 = vector.broadcast %cst_5 : f32 to vector<8x512xf32>
    %15 = arith.mulf %14, %12 : vector<8x512xf32>
    %16 = arith.mulf %15, %12 : vector<8x512xf32>
    %cst_6 = arith.constant 1.000000e-01 : f32
    %17 = vector.broadcast %cst_6 : f32 to vector<8x512xf32>
    %18 = arith.mulf %17, %13 : vector<8x512xf32>
    %19 = arith.addf %16, %18 : vector<8x512xf32>
    %c0_7 = arith.constant 0 : index
    %c0_8 = arith.constant 0 : index
    %20 = vector.load %arg5[%c0_7, %c0_8] : memref<1x512xf32, #tpu.memory_space<vmem>>, vector<1x512xf32>
    %21 = arith.mulf %19, %8 : vector<8x512xf32>
    %cst_9 = arith.constant dense<0.000000e+00> : vector<512xf32>
    %22 = vector.multi_reduction <add>, %21, %cst_9 [0] : vector<8x512xf32> to vector<512xf32>
    %23 = vector.shape_cast %22 : vector<512xf32> to vector<1x512xf32>
    %24 = arith.addf %20, %23 : vector<1x512xf32>
    %c0_10 = arith.constant 0 : index
    %c0_11 = arith.constant 0 : index
    %25 = vector.load %arg5[%c0_10, %c0_11] : memref<1x512xf32, #tpu.memory_space<vmem>>, vector<1x512xf32>
    tpu.vector_store %arg5[%c0_10, %c0_11], %24 {strides = array<i32>} : memref<1x512xf32, #tpu.memory_space<vmem>>, vector<1x512xf32>,
    %c0_i32_12 = arith.constant 0 : i32
    %26 = arith.cmpi eq, %arg1, %c0_i32_12 : i32
    %27 = arith.extui %26 : i1 to i32
    %c0_i32_13 = arith.constant 0 : i32
    %28 = arith.cmpi ne, %27, %c0_i32_13 : i32
    scf.if %28 {
      %c0_14 = arith.constant 0 : index
      %c0_15 = arith.constant 0 : index
      %29 = vector.load %arg5[%c0_14, %c0_15] : memref<1x512xf32, #tpu.memory_space<vmem>>, vector<1x512xf32>
      %30 = vector.shape_cast %29 : vector<1x512xf32> to vector<1x1x512xf32>
      %cst_16 = arith.constant dense<0.000000e+00> : vector<1xf32>
      %31 = vector.multi_reduction <add>, %30, %cst_16 [1, 2] : vector<1x1x512xf32> to vector<1xf32>
      %32 = vector.shape_cast %31 : vector<1xf32> to vector<1x1x1xf32>
      %33 = vector.extract %32[0, 0, 0] : f32 from vector<1x1x1xf32>
      %34 = vector.broadcast %33 : f32 to vector<1x8x128xf32>
      %c0_17 = arith.constant 0 : index
      %c0_18 = arith.constant 0 : index
      %c0_19 = arith.constant 0 : index
      %35 = vector.load %arg4[%c0_17, %c0_18, %c0_19] : memref<1x8x128xf32, #tpu.memory_space<vmem>>, vector<1x8x128xf32>
      tpu.vector_store %arg4[%c0_17, %c0_18, %c0_19], %34 {strides = array<i32>} : memref<1x8x128xf32, #tpu.memory_space<vmem>>, vector<1x8x128xf32>,
    } else {
    }
    return
  }
  func.func @transform_0(%arg0: i32, %arg1: i32) -> (i32, i32) {
    %c1_i32 = arith.constant 1 : i32
    %0 = arith.muli %arg0, %c1_i32 : i32
    %1 = arith.addi %0, %arg1 : i32
    %c0_i32 = arith.constant 0 : i32
    %c0_i32_0 = arith.constant 0 : i32
    return %1, %c0_i32 : i32, i32
  }
  func.func @transform_1(%arg0: i32, %arg1: i32) -> (i32, i32) {
    %c1_i32 = arith.constant 1 : i32
    %0 = arith.muli %arg0, %c1_i32 : i32
    %1 = arith.addi %0, %arg1 : i32
    %c0_i32 = arith.constant 0 : i32
    %c0_i32_0 = arith.constant 0 : i32
    return %1, %c0_i32 : i32, i32
  }
  func.func @transform_2(%arg0: i32, %arg1: i32) -> (i32, i32, i32) {
    %c0_i32 = arith.constant 0 : i32
    %c0_i32_0 = arith.constant 0 : i32
    %c0_i32_1 = arith.constant 0 : i32
    return %arg0, %c0_i32, %c0_i32_0 : i32, i32, i32
  }
}

</mosaic_0001>

<bundles_post_ra>
// kernel: detection_loss.2
= control target key start
LH: loop header
LB: loop body
LE: loop exit
PB: predicated region body
PF: predicated region fallthrough
CT: control target
= control target key end

     0   :  { %s645_s9 = smov 0   ;;  %s647_s10 = smov 0   ;;  %s756_s0 = inlined_call_operand.vmem [shape: f32[16,512], index: 0, kind: input, shape index: {}]   ;;  %s757_s1 = inlined_call_operand.vmem [shape: f32[16,512], index: 1, kind: input, shape index: {}]   ;;  %s758_s2 = inlined_call_operand.vmem [shape: f32[2,8,128], index: 2, kind: output, shape index: {}]  }
   0x1   :  { %s649_s11 = smov 0  }
   0x2 LB: > { %s24_s12 = sadd.s32 1, %s622_s10  ;;  %p534_p0 = scmp.ge.s32.totalorder %s626_s11, 1  ;;  %s626_s11 = sphi %s649_s11, %s12_s11   ;;  %s622_s10 = sphi %s647_s10, %s762_s10   ;;  %s618_s9 = sphi %s645_s9, %s761_s9  }
   0x3   : > { %p26_p1 = scmp.ge.s32.totalorder %s24_s12, 2  ;;  %p142_p2 = scmp.lt.s32.totalorder %s626_s11, 3 }
   0x5   : > { %s764_s12 = smov (%p26_p1, %s24_s12), 0  ;;  %p143_p3 = pnand %p534_p0, %p142_p2 }
   0x6   : > { %p171_p4 = scmp.lt.s32.totalorder (!%p143_p3), %s618_s9, 1  ;;  %v192_v0 = vlaneseq (!%p143_p3)  ;;  %v628_v2 = vmov (!%p143_p3), 0.0   ;;  %vm438_vm13 = vcmask (!%p143_p3), 1040384  }
   0x7   : > { %146 = sbr.rel (%p143_p3) target bundleno = 320 (0x140), region = 28 }
   0x8   : > { %vm666_vm0 = vcmp.lt.s32.totalorder (!%p143_p3), %v192_v0, 512 }
   0x9   : > { %196 = vst.msk [vmem:[#allocation2] sm:$0xf] (!%p143_p3), %vm666_vm0, %v628_v2 }
   0xe   : > { %s766_s9 = smov (!%p171_p4, %s618_s9), 1 }
   0xf   : > { %s550_s13 = sshll.u32 %s766_s9, 5  ;;  %s539_s20 = sshll.u32 %s766_s9, 3 }
  0x10   : > { %s175_s16 = scalar_lea.vmem %s756_s0, %s550_s13  ;;  %s182_s19 = scalar_lea.vmem %s757_s1, %s550_s13 }
  0x11   : > { %v677_v3 = vld [vmem:[%s175_s16] sm:$0xff]  ;;  %v679_v4 = vld [vmem:[%s175_s16 + $0x8] sm:$0xff]  ;;  %v681_v5 = vld [vmem:[%s175_s16 + $0x10] sm:$0xff]  ;;  %s187_s23 = scalar_lea.vmem %s758_s2, %s539_s20 }
  0x12   : > { %v683_v6 = vld [vmem:[%s175_s16 + $0x18] sm:$0xff]  ;;  %v205_v7 = vand.u32 2147483647, %v677_v3  ;;  %v206_v8 = vand.u32 2147483647, %v679_v4  ;;  %v692_v23 = vld [vmem:[%s182_s19] sm:$0xff] }
  0x13   : > { %v207_v9 = vand.u32 2147483647, %v681_v5  ;;  %v208_v10 = vand.u32 2147483647, %v683_v6  ;;  %v694_v26 = vld [vmem:[%s182_s19 + $0x8] sm:$0xff]  ;;  %v696_v28 = vld [vmem:[%s182_s19 + $0x10] sm:$0xff]  ;;  %v269_v54 = vmul.f32 %v692_v23, %v677_v3 }
  0x14   : > { %v209_v11 = vsub.f32 0.0, %v205_v7  ;;  %v210_v12 = vsub.f32 0.0, %v206_v8  ;;  %v257_v30 = vsub.f32 0.0, %v677_v3  ;;  %v699_v31 = vld [vmem:[%s182_s19 + $0x18] sm:$0xff]  ;;  %v281_v34 = vsub.f32 0.0, %v692_v23 }
  0x15   : > { %v211_v13 = vsub.f32 0.0, %v207_v9  ;;  %v212_v14 = vsub.f32 0.0, %v208_v10  ;;  %v258_v36 = vsub.f32 0.0, %v679_v4  ;;  %v282_v37 = vsub.f32 0.0, %v694_v26 }
  0x16   : > { %v213_v15 = vmul.f32 1.442695, %v209_v11  ;;  %v215_v16 = vmul.f32 1.442695, %v210_v12  ;;  %v259_v38 = vsub.f32 0.0, %v681_v5  ;;  %v283_v39 = vsub.f32 0.0, %v696_v28 }
  0x17   : > { %v217_v17 = vmul.f32 1.442695, %v211_v13  ;;  %v219_v18 = vmul.f32 1.442695, %v212_v14  ;;  %v260_v42 = vsub.f32 0.0, %v683_v6  ;;  %v284_v43 = vsub.f32 0.0, %v699_v31 }
  0x18   : > { %580 = vpow2.f32 %v213_v15  ;;  %v261_v46 = vmax.f32 %v257_v30, 0.0  ;;  %v285_v47 = vmul.f32 %v281_v34, %v677_v3  ;;  %v262_v50 = vmax.f32 %v258_v36, 0.0 }
  0x19   : > { %582 = vpow2.f32 %v215_v16  ;;  %v286_v51 = vmul.f32 %v282_v37, %v679_v4  ;;  %v263_v53 = vmax.f32 %v259_v38, 0.0  ;;  %v287_v55 = vmul.f32 %v283_v39, %v681_v5 }
  0x1a   : > { %584 = vpow2.f32 %v217_v17  ;;  %v264_v58 = vmax.f32 %v260_v42, 0.0  ;;  %v288_v59 = vmul.f32 %v284_v43, %v683_v6  ;;  %v289_v63 = vsub.f32 %v285_v47, %v261_v46 }
  0x1b   : > { %586 = vpow2.f32 %v219_v18  ;;  %v290_v10 = vsub.f32 %v286_v51, %v262_v50  ;;  %v270_v13 = vmul.f32 %v694_v26, %v679_v4  ;;  %v291_v14 = vsub.f32 %v287_v55, %v263_v53 }
  0x1c   : > { %v265_v18 = vmax.f32 %v677_v3, 0.0  ;;  %vm309_vm5 = vcmp.eq.f32.partialorder %v692_v23, 1.0  ;;  %v266_v30 = vmax.f32 %v679_v4, 0.0  ;;  %vm310_vm6 = vcmp.eq.f32.partialorder %v694_v26, 1.0 }
  0x1d   : > { %vm311_vm7 = vcmp.eq.f32.partialorder %v696_v28, 1.0  ;;  %v540_v38 = vsel %vm309_vm5, 1.0, %v628_v2  ;;  %v268_v39 = vmax.f32 %v683_v6, 0.0  ;;  %vm312_vm8 = vcmp.eq.f32.partialorder %v699_v31, 1.0 }
  0x1e   : > { %v541_v4 = vsel %vm310_vm6, 1.0, %v628_v2  ;;  %v542_v43 = vsel %vm311_vm7, 1.0, %v628_v2  ;;  %v333_v46 = vmul.f32 -0.5, %v540_v38  ;;  %v273_v50 = vsub.f32 %v265_v18, %v269_v54 }
  0x1f   : > { %vm321_vm9 = vcmp.ne.f32.partialorder %v692_v23, -2.0  ;;  %v335_v51 = vmul.f32 -0.5, %v542_v43  ;;  %vm322_vm10 = vcmp.ne.f32.partialorder %v694_v26, -2.0  ;;  %vm323_vm11 = vcmp.ne.f32.partialorder %v696_v28, -2.0 }
  0x20   : > { %vm324_vm12 = vcmp.ne.f32.partialorder %v699_v31, -2.0  ;;  %v545_v54 = vsel %vm322_vm10, 1.0, %v628_v2  ;;  %v388_v38 = vshrl.u32 %v192_v0, 7 }
  0x21   : > { %v339_v23 = vadd.f32 0.75, %v335_v51 }
  0x22   : > { %v581_v19 = vpop.eup %580 }
  0x23   : > { %v583_v20 = vpop.eup %582  ;;  %v221_v21 = vadd.f32 1.0, %v581_v19  ;;  %v224_v29 = vmul.f32 -0.5, %v581_v19  ;;  %v227_v44 = vand.u32 2147483647, %v581_v19 }
  0x24   : > { %v585_v22 = vpop.eup %584  ;;  %v230_v24 = vadd.f32 1.0, %v583_v20  ;;  %v233_v32 = vmul.f32 -0.5, %v583_v20  ;;  %v236_v48 = vand.u32 2147483647, %v583_v20 }
  0x25   : > { %v587_v25 = vpop.eup %586  ;;  %588 = vlog2.f32 %v221_v21  ;;  %v239_v27 = vadd.f32 1.0, %v585_v22  ;;  %v242_v35 = vmul.f32 -0.5, %v585_v22  ;;  %v225_v40 = vadd.f32 1.0, %v224_v29 }
  0x26   : > { %590 = vlog2.f32 %v230_v24  ;;  %v248_v33 = vadd.f32 1.0, %v587_v25  ;;  %v251_v41 = vmul.f32 -0.5, %v587_v25  ;;  %v234_v45 = vadd.f32 1.0, %v233_v32 }
  0x27   : > { %592 = vlog2.f32 %v239_v27  ;;  %v243_v49 = vadd.f32 1.0, %v242_v35  ;;  %v245_v52 = vand.u32 2147483647, %v585_v22  ;;  %v226_v56 = vmul.f32 %v581_v19, %v225_v40 }
  0x28   : > { %594 = vlog2.f32 %v248_v33  ;;  %v252_v57 = vadd.f32 1.0, %v251_v41  ;;  %vm228_vm1 = vcmp.lt.f32.partialorder %v227_v44, 0.0004427343  ;;  %v235_v61 = vmul.f32 %v583_v20, %v234_v45 }
  0x29   : > { %v254_v62 = vand.u32 2147483647, %v587_v25  ;;  %vm237_vm2 = vcmp.lt.f32.partialorder %v236_v48, 0.0004427343  ;;  %v244_v9 = vmul.f32 %v585_v22, %v243_v49  ;;  %vm246_vm3 = vcmp.lt.f32.partialorder %v245_v52, 0.0004427343 }
  0x2a   : > { %v253_v17 = vmul.f32 %v587_v25, %v252_v57  ;;  %v292_v21 = vsub.f32 %v288_v59, %v264_v58  ;;  %v267_v25 = vmax.f32 %v681_v5, 0.0  ;;  %v271_v44 = vmul.f32 %v696_v28, %v681_v5 }
  0x2b   : > { %vm255_vm4 = vcmp.lt.f32.partialorder %v254_v62, 0.0004427343  ;;  %v272_v45 = vmul.f32 %v699_v31, %v683_v6  ;;  %v543_v48 = vsel %vm312_vm8, 1.0, %v628_v2  ;;  %v334_v49 = vmul.f32 -0.5, %v541_v4 }
  0x2c   : > { %v274_v52 = vsub.f32 %v266_v30, %v270_v13  ;;  %v275_v53 = vsub.f32 %v267_v25, %v271_v44  ;;  %v336_v5 = vmul.f32 -0.5, %v543_v48  ;;  %v337_v6 = vadd.f32 0.75, %v333_v46 }
  0x2d   : > { %v276_v55 = vsub.f32 %v268_v39, %v272_v45  ;;  %v338_v57 = vadd.f32 0.75, %v334_v49  ;;  %v547_v28 = vsel %vm324_vm12, 1.0, %v628_v2 }
  0x2e   : > { %v340_v26 = vadd.f32 0.75, %v336_v5 }
  0x2f   : > { %v589_v60 = vpop.eup %588 }
  0x30   : > { %v591_v7 = vpop.eup %590  ;;  %v223_v8 = vmul.f32 0.6931472, %v589_v60  ;;  %v546_v60 = vsel %vm323_vm11, 1.0, %v628_v2  ;;  %v344_v31 = vmul.f32 %v547_v28, %v340_v26 }
  0x31   : > { %v593_v11 = vpop.eup %592  ;;  %v232_v12 = vmul.f32 0.6931472, %v591_v7  ;;  %v342_v7 = vmul.f32 %v545_v54, %v338_v57  ;;  %v420_v57 = vsub.s32 0, %v388_v38  ;;  %v428_v54 = vsub.s32 2, %v388_v38 }
  0x32   : > { %v229_v15 = vsel %vm228_vm1, %v226_v56, %v223_v8  ;;  %v241_v16 = vmul.f32 0.6931472, %v593_v11  ;;  %v595_v19 = vpop.eup %594  ;;  %v544_v56 = vsel %vm321_vm9, 1.0, %v628_v2 }
  0x33   : > { %v238_v20 = vsel %vm237_vm2, %v235_v61, %v232_v12  ;;  %v293_v24 = vsub.f32 %v289_v63, %v229_v15  ;;  %v250_v22 = vmul.f32 0.6931472, %v595_v19  ;;  %v277_v58 = vadd.f32 %v273_v50, %v229_v15 }
  0x34   : > { %v247_v27 = vsel %vm246_vm3, %v244_v9, %v241_v16  ;;  %v294_v29 = vsub.f32 %v290_v10, %v238_v20  ;;  %v278_v59 = vadd.f32 %v274_v52, %v238_v20  ;;  %v341_v62 = vmul.f32 %v544_v56, %v337_v6 }
  0x35   : > { %v295_v32 = vsub.f32 %v291_v14, %v247_v27  ;;  %v297_v33 = vmul.f32 1.5, %v293_v24  ;;  %v256_v34 = vsel %vm255_vm4, %v253_v17, %v250_v22  ;;  %v279_v61 = vadd.f32 %v275_v53, %v247_v27 }
  0x36   : > { %v298_v3 = vmul.f32 1.5, %v294_v29  ;;  %v296_v35 = vsub.f32 %v292_v21, %v256_v34  ;;  %v280_v9 = vadd.f32 %v276_v55, %v256_v34  ;;  %v343_v10 = vmul.f32 %v546_v60, %v339_v23  ;;  %v353_v55 = vld [vmem:[#allocation2] sm:$0xf] }
  0x37   : > { %v299_v36 = vmul.f32 1.5, %v295_v32  ;;  %v301_v37 = vmul.f32 1.442695, %v297_v33  ;;  %v629_v33 = vmov 1966171168   ;;  %v432_v23 = vsub.s32 3, %v388_v38 }
  0x38   : > { %v303_v40 = vmul.f32 1.442695, %v298_v3  ;;  %v300_v41 = vmul.f32 1.5, %v296_v35  ;;  %v385_v34 = vunpack.c.l.s4 %v629_v33 }
  0x39   : > { %596 = vpow2.f32 %v301_v37  ;;  %v305_v42 = vmul.f32 1.442695, %v299_v36 }
  0x3a   : > { %598 = vpow2.f32 %v303_v40  ;;  %v307_v47 = vmul.f32 1.442695, %v300_v41  ;;  %v386_v41 = vunpack.c.0.s8 %v385_v34 }
  0x3b   : > { %600 = vpow2.f32 %v305_v42 }
  0x3c   : > { %602 = vpow2.f32 %v307_v47  ;;  %v389_v49 = vsub.s32 %v386_v41, %v388_v38 }
  0x43   : > { %v597_v63 = vpop.eup %596 }
  0x44   : > { %v599_v8 = vpop.eup %598  ;;  %v345_v11 = vmul.f32 %v597_v63, %v277_v58  ;;  %v424_v58 = vsub.s32 1, %v388_v38 }
  0x45   : > { %v601_v12 = vpop.eup %600  ;;  %v346_v13 = vmul.f32 %v599_v8, %v278_v59 }
  0x46   : > { %v347_v14 = vmul.f32 %v601_v12, %v279_v61  ;;  %v349_v15 = vmul.f32 %v345_v11, %v341_v62  ;;  %v603_v16 = vpop.eup %602 }
  0x47   : > { %v350_v17 = vmul.f32 %v346_v13, %v342_v7  ;;  %v348_v18 = vmul.f32 %v603_v16, %v280_v9 }
  0x48   : > { %v351_v19 = vmul.f32 %v347_v14, %v343_v10  ;;  %v354_v20 = vrot.slane %v349_v15, 4 }
  0x49   : > { %v360_v21 = vrot.slane %v350_v17, 4  ;;  %v352_v24 = vmul.f32 %v348_v18, %v344_v31 }
  0x4a   : > { %v355_v27 = vadd.f32 %v354_v20, %v349_v15  ;;  %v366_v22 = vrot.slane %v351_v19, 4 }
  0x4b   : > { %v361_v2 = vadd.f32 %v360_v21, %v350_v17  ;;  %v372_v32 = vrot.slane %v352_v24, 4 }
  0x4c   : > { %v356_v29 = vrot.slane %v355_v27, 2  ;;  %v367_v30 = vadd.f32 %v366_v22, %v351_v19 }
  0x4d   : > { %v362_v25 = vrot.slane %v361_v2, 2  ;;  %v373_v36 = vadd.f32 %v372_v32, %v352_v24 }
  0x4e   : > { %v357_v3 = vadd.f32 %v356_v29, %v355_v27  ;;  %v368_v35 = vrot.slane %v367_v30, 2 }
  0x4f   : > { %v363_v37 = vadd.f32 %v362_v25, %v361_v2  ;;  %v374_v4 = vrot.slane %v373_v36, 2 }
  0x50   : > { %v358_v39 = vrot.slane %v357_v3, 1  ;;  %v369_v40 = vadd.f32 %v368_v35, %v367_v30 }
  0x51   : > { %v364_v42 = vrot.slane %v363_v37, 1  ;;  %v375_v45 = vadd.f32 %v374_v4, %v373_v36 }
  0x52   : > { %v359_v43 = vadd.f32 %v358_v39, %v357_v3  ;;  %v370_v44 = vrot.slane %v369_v40, 1 }
  0x53   : > { %v365_v46 = vadd.f32 %v364_v42, %v363_v37  ;;  %v376_v48 = vrot.slane %v375_v45, 1 }
  0x54   : > { %v371_v47 = vadd.f32 %v370_v44, %v369_v40 }
  0x55   : > { %v382_v50 = vcombine.low %v359_v43, %v365_v46  ;;  %v377_v51 = vadd.f32 %v376_v48, %v375_v45 }
  0x57   : > { %v383_v52 = vcombine.low %v371_v47, %v377_v51  ;;  %v390_v53 = vrot.slane %v382_v50, %v389_v49 }
  0x59   : > { %v397_v5 = vrot.slane %v383_v52, %v389_v49 }
  0x5b   : > { %v398_v6 = vcombine.low %v390_v53, %v397_v5 }
  0x5d   : > { %v405_v0 = vrot.slane %v398_v6, %v389_v49 }
  0x5f   : > { %v407_v56 = vadd.f32 %v405_v0, %v353_v55 }
  0x61   : > { %412 = vst.msk [vmem:[#allocation2] sm:$0xf] %vm666_vm0, %v407_v56 }
  0x68   : > { %v416_v59 = vld [vmem:[#allocation2] sm:$0xf] }
  0x69   : > { %v421_v60 = vrot.slane %v416_v59, %v420_v57  ;;  %v425_v61 = vrot.slane %v416_v59, %v424_v58  ;;  %v429_v26 = vrot.slane %v416_v59, %v428_v54  ;;  %v433_v62 = vrot.slane %v416_v59, %v432_v23 }
  0x6b   : > { %v439_v63 = vsel %vm438_vm13, %v421_v60, 0.0  ;;  %v440_v28 = vsel %vm438_vm13, %v425_v61, 0.0  ;;  %v442_v7 = vsel %vm438_vm13, %v429_v26, 0.0  ;;  %v444_v9 = vsel %vm438_vm13, %v433_v62, 0.0 }
  0x6c   : > { %v441_v8 = vadd.f32 %v440_v28, %v439_v63 }
  0x6e   : > { %v443_v10 = vadd.f32 %v442_v7, %v441_v8 }
  0x70   : > { %v445_v11 = vadd.f32 %v444_v9, %v443_v10 }
  0x72   : > { %446 = vadd.xlane.f32.xlu0 %v445_v11 }
  0xff   : > { %v447_v1 = vpop.xlane.xlu0 %446 }
 0x100   : > { %v448_v12 = vrot.slane %v447_v1, 4 }
 0x102   : > { %v449_v13 = vadd.f32 %v448_v12, %v447_v1 }
 0x104   : > { %v450_v31 = vrot.slane %v449_v13, 2 }
 0x106   : > { %v451_v14 = vadd.f32 %v450_v31, %v449_v13 }
 0x108   : > { %v452_v15 = vrot.slane %v451_v14, 1 }
 0x10a   : > { %v453_v16 = vadd.f32 %v452_v15, %v451_v14 }
 0x10c   : > { %552 = vpush %v453_v16 }
 0x13d   : > { %s553_s24 = spop %552 }
 0x13e   : > { %v455_v17 = vstv %s553_s24 }
 0x13f   : > { %456 = vst [vmem:[%s187_s23] sm:$0xff] %v455_v17 }
 0x140 PF: > { %s12_s11 = sadd.s32 1, %s626_s11   ;;  %s761_s9 = smov %s622_s10 }
 0x141   : > { %p9_p5 = scmp.ge.s32.totalorder %s12_s11, 4   ;;  %s762_s10 = smov %s764_s12 }
 0x143   :  { %11 = sbr.rel (!%p9_p5) target bundleno = 2 (0x2), region = 69 }

// kernel: detection_loss.3
= control target key start
LH: loop header
LB: loop body
LE: loop exit
PB: predicated region body
PF: predicated region fallthrough
CT: control target
= control target key end

     0   :  { %s517_s9 = smov 0   ;;  %s519_s10 = smov 0   ;;  %s569_s0 = inlined_call_operand.vmem [shape: f32[16,512], index: 0, kind: input, shape index: {}]   ;;  %s570_s1 = inlined_call_operand.vmem [shape: f32[16,512], index: 1, kind: input, shape index: {}]   ;;  %s571_s2 = inlined_call_operand.vmem [shape: f32[2,8,128], index: 2, kind: output, shape index: {}]  }
   0x1   :  { %s521_s11 = smov 0  }
   0x2 LB: > { %s24_s12 = sadd.s32 1, %s494_s10  ;;  %p434_p0 = scmp.ge.s32.totalorder %s498_s11, 1  ;;  %s498_s11 = sphi %s521_s11, %s12_s11   ;;  %s494_s10 = sphi %s519_s10, %s575_s10   ;;  %s490_s9 = sphi %s517_s9, %s574_s9  }
   0x3   : > { %p26_p1 = scmp.ge.s32.totalorder %s24_s12, 2  ;;  %p142_p2 = scmp.lt.s32.totalorder %s498_s11, 3 }
   0x5   : > { %s577_s12 = smov (%p26_p1, %s24_s12), 0  ;;  %p143_p3 = pnand %p434_p0, %p142_p2 }
   0x6   : > { %p171_p4 = scmp.lt.s32.totalorder (!%p143_p3), %s490_s9, 1  ;;  %v192_v0 = vlaneseq (!%p143_p3)  ;;  %v500_v2 = vmov (!%p143_p3), 0.0   ;;  %v501_v57 = vmov (!%p143_p3), 1966171168   ;;  %vm338_vm5 = vcmask (!%p143_p3), 1040384  }
   0x7   : > { %146 = sbr.rel (%p143_p3) target bundleno = 279 (0x117), region = 28  ;;  %v285_v58 = vunpack.c.l.s4 (!%p143_p3), %v501_v57 }
   0x8   : > { %vm538_vm0 = vcmp.lt.s32.totalorder (!%p143_p3), %v192_v0, 512 }
   0x9   : > { %196 = vst.msk [vmem:[#allocation2] sm:$0xf] (!%p143_p3), %vm538_vm0, %v500_v2 }
   0xe   : > { %s579_s9 = smov (!%p171_p4, %s490_s9), 1 }
   0xf   : > { %s446_s13 = sshll.u32 %s579_s9, 5  ;;  %s439_s20 = sshll.u32 %s579_s9, 3 }
  0x10   : > { %s175_s16 = scalar_lea.vmem %s569_s0, %s446_s13  ;;  %s182_s19 = scalar_lea.vmem %s570_s1, %s446_s13 }
  0x11   : > { %v197_v3 = vld [vmem:[%s175_s16] sm:$0xff]  ;;  %v198_v4 = vld [vmem:[%s175_s16 + $0x8] sm:$0xff]  ;;  %v199_v5 = vld [vmem:[%s175_s16 + $0x10] sm:$0xff]  ;;  %s187_s23 = scalar_lea.vmem %s571_s2, %s439_s20 }
  0x12   : > { %v200_v6 = vld [vmem:[%s175_s16 + $0x18] sm:$0xff]  ;;  %v201_v7 = vld [vmem:[%s182_s19] sm:$0xff]  ;;  %v202_v8 = vld [vmem:[%s182_s19 + $0x8] sm:$0xff] }
  0x13   : > { %v203_v9 = vld [vmem:[%s182_s19 + $0x10] sm:$0xff]  ;;  %v204_v10 = vld [vmem:[%s182_s19 + $0x18] sm:$0xff]  ;;  %v217_v11 = vsub.f32 %v197_v3, %v201_v7  ;;  %v218_v12 = vsub.f32 %v198_v4, %v202_v8  ;;  %vm205_vm1 = vcmp.ne.f32.partialorder %v201_v7, 0.0  ;;  %vm206_vm2 = vcmp.ne.f32.partialorder %v202_v8, 0.0 }
  0x14   : > { %v219_v13 = vsub.f32 %v199_v5, %v203_v9  ;;  %v220_v14 = vsub.f32 %v200_v6, %v204_v10  ;;  %vm207_vm3 = vcmp.ne.f32.partialorder %v203_v9, 0.0  ;;  %vm208_vm4 = vcmp.ne.f32.partialorder %v204_v10, 0.0 }
  0x15   : > { %v221_v15 = vand.u32 2147483647, %v217_v11  ;;  %v222_v16 = vand.u32 2147483647, %v218_v12  ;;  %v440_v21 = vsel %vm205_vm1, 1.0, %v500_v2  ;;  %v441_v22 = vsel %vm206_vm2, 1.0, %v500_v2 }
  0x16   : > { %v223_v17 = vand.u32 2147483647, %v219_v13  ;;  %v224_v18 = vand.u32 2147483647, %v220_v14  ;;  %v442_v41 = vsel %vm207_vm3, 1.0, %v500_v2  ;;  %v443_v42 = vsel %vm208_vm4, 1.0, %v500_v2 }
  0x17   : > { %v225_v19 = vmin.f32 %v221_v15, 0.1  ;;  %v226_v20 = vmin.f32 %v222_v16, 0.1  ;;  %v286_v5 = vunpack.c.0.s8 %v285_v58  ;;  %v288_v6 = vshrl.u32 %v192_v0, 7 }
  0x18   : > { %v227_v23 = vmin.f32 %v223_v17, 0.1  ;;  %v228_v24 = vmin.f32 %v224_v18, 0.1 }
  0x19   : > { %v229_v25 = vsub.f32 %v221_v15, %v225_v19  ;;  %v230_v26 = vsub.f32 %v222_v16, %v226_v20  ;;  %v233_v27 = vmul.f32 0.5, %v225_v19  ;;  %v234_v28 = vmul.f32 0.5, %v226_v20 }
  0x1a   : > { %v231_v29 = vsub.f32 %v223_v17, %v227_v23  ;;  %v232_v30 = vsub.f32 %v224_v18, %v228_v24  ;;  %v235_v31 = vmul.f32 0.5, %v227_v23  ;;  %v236_v32 = vmul.f32 0.5, %v228_v24 }
  0x1b   : > { %v237_v33 = vmul.f32 %v233_v27, %v225_v19  ;;  %v238_v34 = vmul.f32 %v234_v28, %v226_v20  ;;  %v241_v35 = vmul.f32 0.1, %v229_v25  ;;  %v242_v36 = vmul.f32 0.1, %v230_v26 }
  0x1c   : > { %v239_v37 = vmul.f32 %v235_v31, %v227_v23  ;;  %v240_v38 = vmul.f32 %v236_v32, %v228_v24  ;;  %v243_v39 = vmul.f32 0.1, %v231_v29  ;;  %v244_v40 = vmul.f32 0.1, %v232_v30  ;;  %v249_v23 = vld [vmem:[#allocation2] sm:$0xf] }
  0x1d   : > { %v245_v43 = vadd.f32 %v241_v35, %v237_v33  ;;  %v246_v44 = vadd.f32 %v242_v36, %v238_v34  ;;  %v289_v15 = vsub.s32 %v286_v5, %v288_v6  ;;  %v320_v0 = vsub.s32 0, %v288_v6 }
  0x1e   : > { %v247_v45 = vadd.f32 %v243_v39, %v239_v37  ;;  %v248_v46 = vadd.f32 %v244_v40, %v240_v38  ;;  %v324_v26 = vsub.s32 1, %v288_v6  ;;  %v328_v27 = vsub.s32 2, %v288_v6 }
  0x1f   : > { %v250_v47 = vmul.f32 %v440_v21, %v245_v43  ;;  %v251_v48 = vmul.f32 %v441_v22, %v246_v44  ;;  %v332_v28 = vsub.s32 3, %v288_v6 }
  0x20   : > { %v252_v49 = vmul.f32 %v442_v41, %v247_v45  ;;  %v253_v50 = vmul.f32 %v443_v42, %v248_v46 }
  0x21   : > { %v254_v51 = vrot.slane %v250_v47, 4  ;;  %v260_v52 = vrot.slane %v251_v48, 4 }
  0x22   : > { %v266_v53 = vrot.slane %v252_v49, 4  ;;  %v272_v54 = vrot.slane %v253_v50, 4 }
  0x23   : > { %v255_v55 = vadd.f32 %v254_v51, %v250_v47  ;;  %v261_v56 = vadd.f32 %v260_v52, %v251_v48 }
  0x24   : > { %v267_v59 = vadd.f32 %v266_v53, %v252_v49  ;;  %v273_v60 = vadd.f32 %v272_v54, %v253_v50 }
  0x25   : > { %v256_v61 = vrot.slane %v255_v55, 2  ;;  %v262_v62 = vrot.slane %v261_v56, 2 }
  0x26   : > { %v268_v63 = vrot.slane %v267_v59, 2  ;;  %v274_v2 = vrot.slane %v273_v60, 2 }
  0x27   : > { %v257_v3 = vadd.f32 %v256_v61, %v255_v55  ;;  %v263_v4 = vadd.f32 %v262_v62, %v261_v56 }
  0x28   : > { %v269_v7 = vadd.f32 %v268_v63, %v267_v59  ;;  %v275_v8 = vadd.f32 %v274_v2, %v273_v60 }
  0x29   : > { %v258_v9 = vrot.slane %v257_v3, 1  ;;  %v264_v10 = vrot.slane %v263_v4, 1 }
  0x2a   : > { %v270_v11 = vrot.slane %v269_v7, 1  ;;  %v276_v12 = vrot.slane %v275_v8, 1 }
  0x2b   : > { %v259_v13 = vadd.f32 %v258_v9, %v257_v3  ;;  %v265_v14 = vadd.f32 %v264_v10, %v263_v4 }
  0x2c   : > { %v271_v16 = vadd.f32 %v270_v11, %v269_v7  ;;  %v277_v17 = vadd.f32 %v276_v12, %v275_v8 }
  0x2d   : > { %v282_v18 = vcombine.low %v259_v13, %v265_v14 }
  0x2e   : > { %v283_v19 = vcombine.low %v271_v16, %v277_v17 }
  0x2f   : > { %v290_v20 = vrot.slane %v282_v18, %v289_v15 }
  0x30   : > { %v297_v21 = vrot.slane %v283_v19, %v289_v15 }
  0x32   : > { %v298_v22 = vcombine.low %v290_v20, %v297_v21 }
  0x34   : > { %v305_v24 = vrot.slane %v298_v22, %v289_v15 }
  0x36   : > { %v307_v25 = vadd.f32 %v305_v24, %v249_v23 }
  0x38   : > { %312 = vst.msk [vmem:[#allocation2] sm:$0xf] %vm538_vm0, %v307_v25 }
  0x3f   : > { %v316_v29 = vld [vmem:[#allocation2] sm:$0xf] }
  0x40   : > { %v321_v30 = vrot.slane %v316_v29, %v320_v0  ;;  %v325_v31 = vrot.slane %v316_v29, %v324_v26  ;;  %v329_v32 = vrot.slane %v316_v29, %v328_v27  ;;  %v333_v33 = vrot.slane %v316_v29, %v332_v28 }
  0x42   : > { %v339_v34 = vsel %vm338_vm5, %v321_v30, 0.0  ;;  %v340_v35 = vsel %vm338_vm5, %v325_v31, 0.0  ;;  %v342_v36 = vsel %vm338_vm5, %v329_v32, 0.0  ;;  %v344_v38 = vsel %vm338_vm5, %v333_v33, 0.0 }
  0x43   : > { %v341_v37 = vadd.f32 %v340_v35, %v339_v34 }
  0x45   : > { %v343_v39 = vadd.f32 %v342_v36, %v341_v37 }
  0x47   : > { %v345_v40 = vadd.f32 %v344_v38, %v343_v39 }
  0x49   : > { %346 = vadd.xlane.f32.xlu0 %v345_v40 }
  0xd6   : > { %v347_v1 = vpop.xlane.xlu0 %346 }
  0xd7   : > { %v348_v41 = vrot.slane %v347_v1, 4 }
  0xd9   : > { %v349_v42 = vadd.f32 %v348_v41, %v347_v1 }
  0xdb   : > { %v350_v43 = vrot.slane %v349_v42, 2 }
  0xdd   : > { %v351_v44 = vadd.f32 %v350_v43, %v349_v42 }
  0xdf   : > { %v352_v45 = vrot.slane %v351_v44, 1 }
  0xe1   : > { %v353_v46 = vadd.f32 %v352_v45, %v351_v44 }
  0xe3   : > { %448 = vpush %v353_v46 }
 0x114   : > { %s449_s24 = spop %448 }
 0x115   : > { %v355_v47 = vstv %s449_s24 }
 0x116   : > { %356 = vst [vmem:[%s187_s23] sm:$0xff] %v355_v47 }
 0x117 PF: > { %s12_s11 = sadd.s32 1, %s498_s11   ;;  %s574_s9 = smov %s494_s10 }
 0x118   : > { %p9_p5 = scmp.ge.s32.totalorder %s12_s11, 4   ;;  %s575_s10 = smov %s577_s12 }
 0x11a   :  { %11 = sbr.rel (!%p9_p5) target bundleno = 2 (0x2), region = 69 }

</bundles_post_ra>
